<compile_context>
chip_gen: v6e
topology: v6e:2x2x1
jax: 0.10.0
libtpu: 0.0.40
codegen_flags: <defaults>
</compile_context>

<pallas_src>
import functools

import jax
import jax.numpy as jnp
from jax import lax
from jax.experimental import pallas as pl
from jax.experimental.pallas import tpu as pltpu

TEMP = 0.05
TOP_PERCENT = 0.1


def _round_up(x, m):
    return ((x + m - 1) // m) * m


def _tpu_vmem_bytes():
    """Physical VMEM capacity (bytes); conservative 64 MiB fallback (v7x-safe)."""
    try:
        info = pltpu.get_tpu_info()
        v = getattr(info, "vmem_capacity_bytes", None)
        if v:
            return int(v)
    except Exception:
        pass
    return 64 * 1024 * 1024


# ----------------------------------------------------------------------------
# Kernel 1 (fused): cluster-centroid reduction + normalize + sim + exp * mask
# ----------------------------------------------------------------------------
def _centroid_exp_kernel(x_ref, lbl_ref, f_ref, out_ref,
                         xn_ref, cent_ref, cnt_ref, *,
                         inv_temp, tm, labels_resident):
    j = pl.program_id(0)                 # cluster-column tile (parallel)
    k = pl.program_id(1)                 # memory-row tile     (reduction)
    tc = out_ref.shape[-1]

    @pl.when(k == 0)
    def _init():
        x = x_ref[...]
        nrm = jnp.sqrt(jnp.sum(x * x, axis=1, keepdims=True))
        xn_ref[...] = x / jnp.maximum(nrm, 1e-12)          # F.normalize(p=2, dim=1)
        cent_ref[...] = jnp.zeros_like(cent_ref)
        cnt_ref[...] = jnp.zeros_like(cnt_ref)

    if labels_resident:
        off = pl.multiple_of(k * tm, tm)
        lbl = lbl_ref[pl.ds(off, tm), :]                   # (tm, 1) from resident block
    else:
        lbl = lbl_ref[...]                                 # (tm, 1) per-step tile

    # One-hot label tile built in-register (no (M, C) matrix streamed from HBM).
    col = lax.broadcasted_iota(jnp.int32, (tm, tc), 1) + j * tc
    oh = (col == lbl).astype(jnp.float32)                  # (tm, tc)

    # Per-cluster feature sums on the MXU: (tc, D) += oh^T @ F_tile
    cent_ref[...] += lax.dot_general(
        oh, f_ref[...],
        dimension_numbers=(((0,), (0,)), ((), ())),
        preferred_element_type=jnp.float32)
    cnt_ref[...] += jnp.sum(oh, axis=0, keepdims=True)     # (1, tc) cluster sizes

    @pl.when(k == pl.num_programs(1) - 1)
    def _finalize():
        cnt = cnt_ref[...]
        mask = (cnt > 0.5).astype(jnp.float32)             # occupied clusters
        scale = inv_temp / jnp.maximum(cnt, 1.0)           # fold mean + 1/temp
        logits = lax.dot_general(
            xn_ref[...], cent_ref[...],
            dimension_numbers=(((1,), (1,)), ((), ())),
            preferred_element_type=jnp.float32)            # (B, tc)
        out_ref[...] = jnp.exp(logits * scale) * mask      # masked exps tile


def _k1_vmem_estimate(B, D, m_pad, tm, tc, labels_resident):
    f = 2 * tm * D * 4                       # feature tile, double-buffered
    x = 2 * B * D * 4                        # resident inputs (2 buffers)
    out = 2 * B * tc * 4                     # output tile (2 buffers)
    cent = tc * D * 4                        # centroid accumulator scratch
    xn = B * D * 4                           # normalized inputs scratch
    cnt = 8 * tc * 4                         # counts scratch (sublane-padded)
    oh = 2 * tm * tc * 4                     # one-hot tile + compiler temps
    lbl = (2 * m_pad * 128 * 4) if labels_resident else (2 * tm * 128 * 4)
    return f + x + out + cent + xn + cnt + oh + lbl


def _choose_k1_tiles(B, D, M, c_pad, vmem_cap):
    budget = int(vmem_cap * 0.55)            # headroom under vmem_limit_bytes
    multi_core = vmem_cap <= 80 * 1024 * 1024  # v7x: 64 MiB/TC, 2 TCs per chip

    n128 = c_pad // 128
    tc_cands = sorted({d * 128 for d in range(1, n128 + 1) if n128 % d == 0},
                      reverse=True)
    if multi_core and any(t <= c_pad // 2 for t in tc_cands):
        # keep >=2 "parallel" j tiles so both TensorCores get work
        tc_cands = [t for t in tc_cands if t <= c_pad // 2]

    m_cap = _round_up(M, 8)
    tm_cands = [t for t in (512, 256, 128, 64, 32, 16, 8) if t <= m_cap] or [m_cap]
    labels_resident = (2 * m_cap * 128 * 4) <= 4 * 1024 * 1024   # <= 4 MiB

    for tc in tc_cands:                      # biggest cluster tile first (HBM traffic)
        for tm in tm_cands:                  # then biggest memory-row tile
            m_pad = _round_up(M, tm)
            if _k1_vmem_estimate(B, D, m_pad, tm, tc, labels_resident) <= budget:
                return tm, tc, m_pad, labels_resident
    tm = tm_cands[-1]
    tc = tc_cands[-1]
    return tm, tc, _round_up(M, tm), labels_resident


def compute_masked_exps(x, labels, features, c_pad, temp, vmem_cap):
    B, D = x.shape
    M = features.shape[0]
    tm, tc, m_pad, labels_resident = _choose_k1_tiles(B, D, M, c_pad, vmem_cap)

    if m_pad != M:
        # Padded memory rows: zero features, label -1 -> never matches any
        # cluster column -> contribute nothing to centroids or counts.
        features = jnp.pad(features, ((0, m_pad - M), (0, 0)))
        labels = jnp.pad(labels, (0, m_pad - M), constant_values=-1)
    labels2d = labels.reshape(m_pad, 1)

    if labels_resident:
        lbl_spec = pl.BlockSpec((m_pad, 1), lambda j, k: (0, 0))   # resident, DMA once
    else:
        lbl_spec = pl.BlockSpec((tm, 1), lambda j, k: (k, 0))

    vmem_limit = max(32 * 1024 * 1024, int(vmem_cap * 0.75))

    kernel = functools.partial(_centroid_exp_kernel, inv_temp=1.0 / temp,
                               tm=tm, labels_resident=labels_resident)
    return pl.pallas_call(
        kernel,
        out_shape=jax.ShapeDtypeStruct((B, c_pad), jnp.float32),
        grid_spec=pltpu.PrefetchScalarGridSpec(
            num_scalar_prefetch=0,
            grid=(c_pad // tc, m_pad // tm),
            in_specs=[
                pl.BlockSpec((B, D), lambda j, k: (0, 0)),     # inputs (resident)
                lbl_spec,                                      # int32 labels
                pl.BlockSpec((tm, D), lambda j, k: (k, 0)),    # memory-bank tile
            ],
            out_specs=pl.BlockSpec((B, tc), lambda j, k: (0, j)),
            scratch_shapes=[
                pltpu.VMEM((B, D), jnp.float32),    # normalized inputs
                pltpu.VMEM((tc, D), jnp.float32),   # centroid-sum accumulator
                pltpu.VMEM((1, tc), jnp.float32),   # cluster counts
            ],
        ),
        compiler_params=pltpu.CompilerParams(
            dimension_semantics=("parallel", "arbitrary"),
            vmem_limit_bytes=vmem_limit),
    )(x, labels2d, features)


# ----------------------------------------------------------------------------
# Kernel 2: focal thresholding + masked softmax + per-row NLL
# ----------------------------------------------------------------------------
def _focal_loss_kernel(em_ref, tgt_ref, minv_ref, loss_ref):
    em = em_ref[...]                                       # (tb, C) masked exps
    tb, C = em.shape
    col = lax.broadcasted_iota(jnp.int32, (tb, C), 1)
    pos = (col == tgt_ref[...]).astype(jnp.float32)        # one_hot_pos
    neg = em * (1.0 - pos)                                 # ori_neg_exps
    neg_keep = jnp.where(neg < minv_ref[...], 0.0, neg)    # zero below threshold
    new = em * pos + neg_keep                              # new_exps
    sums = jnp.sum(new, axis=1, keepdims=True) + 1e-6
    pos_val = jnp.sum(new * pos, axis=1, keepdims=True)
    loss_ref[...] = -jnp.log(pos_val / sums + 1e-6)        # nll per row


def focal_loss_rows(em, targets2d, min_values, vmem_cap):
    B, C = em.shape
    budget = int(vmem_cap * 0.4)
    tb_max = max(8, budget // (2 * C * 4))                 # 2x: double-buffered em tile
    tb_max = min(tb_max, _round_up(B, 8))                  # no pointless row padding
    tb = 8
    for cand in (1024, 512, 256, 128, 64, 32, 16, 8):
        if cand <= tb_max:
            tb = cand
            break
    b_pad = _round_up(B, tb)
    if b_pad != B:
        em = jnp.pad(em, ((0, b_pad - B), (0, 0)))
        targets2d = jnp.pad(targets2d, ((0, b_pad - B), (0, 0)))
        min_values = jnp.pad(min_values, ((0, b_pad - B), (0, 0)))

    vmem_limit = max(32 * 1024 * 1024, int(vmem_cap * 0.75))
    out = pl.pallas_call(
        _focal_loss_kernel,
        out_shape=jax.ShapeDtypeStruct((b_pad, 1), jnp.float32),
        grid_spec=pltpu.PrefetchScalarGridSpec(
            num_scalar_prefetch=0,
            grid=(b_pad // tb,),
            in_specs=[
                pl.BlockSpec((tb, C), lambda i: (i, 0)),
                pl.BlockSpec((tb, 1), lambda i: (i, 0)),
                pl.BlockSpec((tb, 1), lambda i: (i, 0)),
            ],
            out_specs=pl.BlockSpec((tb, 1), lambda i: (i, 0)),
        ),
        compiler_params=pltpu.CompilerParams(
            dimension_semantics=("parallel",),
            vmem_limit_bytes=vmem_limit),
    )(em, targets2d, min_values)
    return out[:B]


# ----------------------------------------------------------------------------
# Full forward (aux_inputs=None, augmem_factor=0.0, split_label=False path)
# ----------------------------------------------------------------------------
def hybrid_memory_multi_focal_forward(results, indexes, features, labels,
                                      num_clusters=None,
                                      temp=TEMP, top_percent=TOP_PERCENT):
    B, D = results.shape
    M = features.shape[0]
    if num_clusters is None:
        # labels.max()+1 -- forces a device sync; the static num_clusters path
        # (used in __main__) is the supported / jittable one.
        num_clusters = int(jnp.max(labels)) + 1
    C = int(num_clusters)
    c_pad = _round_up(C, 128)                              # lane-dense cluster dim
    vmem_cap = _tpu_vmem_bytes()

    # Kernel 1: masked exponentiated per-cluster mean similarities (B, c_pad).
    # Padded (empty) clusters get mask=0 -> exactly zero, same as absent ones.
    em = compute_masked_exps(results.astype(jnp.float32),
                             labels.astype(jnp.int32),
                             features.astype(jnp.float32),
                             c_pad, temp, vmem_cap)

    targets = labels[indexes].astype(jnp.int32)            # (B,)
    pos = (jnp.arange(c_pad, dtype=jnp.int32)[None, :] == targets[:, None]
           ).astype(jnp.float32)                           # one_hot_pos
    neg = em * (1.0 - pos)                                 # ori_neg_exps
    neg_sum = jnp.sum(neg, axis=1, keepdims=True)
    inv_neg_sum = 1.0 / jnp.maximum(neg_sum, 1e-12)        # guard empty negatives

    # TODO(synk): descending sort / cumsum / argmin top-percent threshold search
    # has no clean Pallas TPU equivalent (lax.sort does not lower to Mosaic);
    # kept in XLA glue between the two pallas_calls.
    sorted_neg = -jnp.sort(-neg, axis=1)
    cum_norm = jnp.cumsum(sorted_neg, axis=1) * inv_neg_sum
    kidx = jnp.argmin(jnp.abs(cum_norm - top_percent), axis=1)
    min_values = jnp.take_along_axis(sorted_neg, kidx[:, None], axis=1)

    # Kernel 2: focal masked softmax + per-row NLL.
    per_row = focal_loss_rows(em, targets[:, None], min_values, vmem_cap)
    return jnp.mean(per_row)                               # F.nll_loss(reduction='mean')


# ----------------------------------------------------------------------------
# Pure-JAX f32 reference for validation
# ----------------------------------------------------------------------------
def reference_forward(results, indexes, features, labels, num_clusters,
                      temp=TEMP, top_percent=TOP_PERCENT):
    x = results / jnp.maximum(jnp.linalg.norm(results, axis=1, keepdims=True), 1e-12)
    logits = (x @ features.T) / temp
    C = int(num_clusters)
    onehot = (labels[:, None] == jnp.arange(C, dtype=labels.dtype)[None, :]).astype(jnp.float32)
    sim_t = logits @ onehot
    nums = jnp.sum(onehot, axis=0)
    vec = sim_t / jnp.where(nums > 0, nums, 1.0)[None, :]
    maskv = (nums > 0).astype(jnp.float32)[None, :]
    masked = jnp.exp(vec) * maskv
    targets = labels[indexes].astype(jnp.int32)
    pos = (jnp.arange(C)[None, :] == targets[:, None]).astype(jnp.float32)
    neg = masked * (1.0 - pos)
    neg_sum = jnp.sum(neg, axis=1, keepdims=True)
    sorted_neg = -jnp.sort(-neg, axis=1)
    cum_norm = jnp.cumsum(sorted_neg, axis=1) / jnp.maximum(neg_sum, 1e-12)
    kidx = jnp.argmin(jnp.abs(cum_norm - top_percent), axis=1)
    min_values = jnp.take_along_axis(sorted_neg, kidx[:, None], axis=1)
    neg_keep = jnp.where(neg < min_values, 0.0, neg)
    new = masked * pos + neg_keep
    sums = jnp.sum(new, axis=1, keepdims=True) + 1e-6
    p_t = jnp.sum((new / sums) * pos, axis=1)
    return jnp.mean(-jnp.log(p_t + 1e-6))


if __name__ == "__main__":
    key = jax.random.PRNGKey(0)
    k1, k2, k3, k4 = jax.random.split(key, 4)

    B, D, M, NC = 8, 128, 128, 16          # batch, num_features, num_memory, clusters

    results = jax.random.normal(k1, (B, D), dtype=jnp.float32)
    # Memory bank as if _update_feature was called (row-normalized), deterministic.
    feats = jax.random.normal(k2, (M, D), dtype=jnp.float32)
    feats = feats / jnp.linalg.norm(feats, axis=1, keepdims=True)
    labels = jax.random.randint(k3, (M,), 0, NC, dtype=jnp.int32)
    labels = labels.at[0].set(NC - 1)       # make labels.max()+1 == NC
    indexes = jax.random.randint(k4, (B,), 0, M, dtype=jnp.int32)

    fwd = jax.jit(hybrid_memory_multi_focal_forward,
                  static_argnames=("num_clusters", "temp", "top_percent"))
    loss = fwd(results, indexes, feats, labels, num_clusters=NC)
    loss = jax.block_until_ready(loss)

    ref = reference_forward(results, indexes, feats, labels, NC)
    assert jnp.isfinite(loss), "non-finite loss"
    assert jnp.allclose(loss, ref, rtol=1e-3, atol=1e-4), (float(loss), float(ref))

    print("KERNEL_OK")
</pallas_src>

<mosaic_0001>
module attributes {stable_mosaic.version = 11 : i64} {
  func.func @_centroid_exp_kernel(%arg0: i32, %arg1: i32, %arg2: memref<8x128xf32, #tpu.memory_space<vmem>>, %arg3: memref<128x1xi32, #tpu.memory_space<vmem>>, %arg4: memref<128x128xf32, #tpu.memory_space<vmem>>, %arg5: memref<8x128xf32, #tpu.memory_space<vmem>>, %arg6: memref<8x128xf32, #tpu.memory_space<vmem>>, %arg7: memref<128x128xf32, #tpu.memory_space<vmem>>, %arg8: memref<1x128xf32, #tpu.memory_space<vmem>>) attributes {dimension_semantics = [#tpu.dimension_semantics<parallel>, #tpu.dimension_semantics<arbitrary>], iteration_bounds = array<i64: 1, 1>, scalar_prefetch = 0 : i64, scratch_operands = 3 : i64, tpu.core_type = #tpu.core_type<tc>, window_params = [{pipeline_mode = #tpu.pipeline_mode<synchronous>, transform_indices = @transform_0, window_bounds = array<i64: 8, 128>}, {pipeline_mode = #tpu.pipeline_mode<synchronous>, transform_indices = @transform_1, window_bounds = array<i64: 128, 1>}, {transform_indices = @transform_2, window_bounds = array<i64: 128, 128>}, {transform_indices = @transform_3, window_bounds = array<i64: 8, 128>}]} {
    %c0_i32 = arith.constant 0 : i32
    %0 = arith.cmpi eq, %arg1, %c0_i32 : i32
    %1 = arith.extui %0 : i1 to i32
    %c0_i32_0 = arith.constant 0 : i32
    %2 = arith.cmpi ne, %1, %c0_i32_0 : i32
    scf.if %2 {
      %c0_15 = arith.constant 0 : index
      %c0_16 = arith.constant 0 : index
      %28 = vector.load %arg2[%c0_15, %c0_16] : memref<8x128xf32, #tpu.memory_space<vmem>>, vector<8x128xf32>
      %29 = arith.mulf %28, %28 : vector<8x128xf32>
      %cst_17 = arith.constant dense<0.000000e+00> : vector<8xf32>
      %30 = vector.multi_reduction <add>, %29, %cst_17 [1] : vector<8x128xf32> to vector<8xf32>
      %31 = vector.shape_cast %30 : vector<8xf32> to vector<8x1xf32>
      %32 = math.sqrt %31 : vector<8x1xf32>
      %cst_18 = arith.constant 9.99999996E-13 : f32
      %33 = vector.broadcast %cst_18 : f32 to vector<8x1xf32>
      %34 = arith.maximumf %32, %33 : vector<8x1xf32>
      %35 = vector.broadcast %34 : vector<8x1xf32> to vector<8x128xf32>
      %36 = arith.divf %28, %35 : vector<8x128xf32>
      %c0_19 = arith.constant 0 : index
      %c0_20 = arith.constant 0 : index
      %37 = vector.load %arg6[%c0_19, %c0_20] : memref<8x128xf32, #tpu.memory_space<vmem>>, vector<8x128xf32>
      tpu.vector_store %arg6[%c0_19, %c0_20], %36 {strides = array<i32>} : memref<8x128xf32, #tpu.memory_space<vmem>>, vector<8x128xf32>,
      %cst_21 = arith.constant 0.000000e+00 : f32
      %38 = vector.broadcast %cst_21 : f32 to vector<128x128xf32>
      %c0_22 = arith.constant 0 : index
      %c0_23 = arith.constant 0 : index
      %39 = vector.load %arg7[%c0_22, %c0_23] : memref<128x128xf32, #tpu.memory_space<vmem>>, vector<128x128xf32>
      tpu.vector_store %arg7[%c0_22, %c0_23], %38 {strides = array<i32>} : memref<128x128xf32, #tpu.memory_space<vmem>>, vector<128x128xf32>,
      %cst_24 = arith.constant 0.000000e+00 : f32
      %40 = vector.broadcast %cst_24 : f32 to vector<1x128xf32>
      %c0_25 = arith.constant 0 : index
      %c0_26 = arith.constant 0 : index
      %41 = vector.load %arg8[%c0_25, %c0_26] : memref<1x128xf32, #tpu.memory_space<vmem>>, vector<1x128xf32>
      tpu.vector_store %arg8[%c0_25, %c0_26], %40 {strides = array<i32>} : memref<1x128xf32, #tpu.memory_space<vmem>>, vector<1x128xf32>,
    } else {
    }
    %c128_i32 = arith.constant 128 : i32
    %3 = arith.muli %arg1, %c128_i32 : i32
    %4 = tpu.assume_multiple %3, 128 : i32
    %5 = arith.index_cast %4 : i32 to index
    %c0 = arith.constant 0 : index
    %6 = vector.load %arg3[%5, %c0] : memref<128x1xi32, #tpu.memory_space<vmem>>, vector<128x1xi32>
    %7 = tpu.iota {dimensions = array<i32: 1>} : vector<128x128xi32>
    %c128_i32_1 = arith.constant 128 : i32
    %8 = arith.muli %arg0, %c128_i32_1 : i32
    %9 = vector.broadcast %8 : i32 to vector<128x128xi32>
    %10 = arith.addi %7, %9 : vector<128x128xi32>
    %11 = vector.broadcast %6 : vector<128x1xi32> to vector<128x128xi32>
    %12 = arith.cmpi eq, %10, %11 : vector<128x128xi32>
    %13 = arith.extui %12 : vector<128x128xi1> to vector<128x128xi32>
    %14 = arith.sitofp %13 : vector<128x128xi32> to vector<128x128xf32>
    %c0_2 = arith.constant 0 : index
    %c0_3 = arith.constant 0 : index
    %15 = vector.load %arg7[%c0_2, %c0_3] : memref<128x128xf32, #tpu.memory_space<vmem>>, vector<128x128xf32>
    %c0_4 = arith.constant 0 : index
    %c0_5 = arith.constant 0 : index
    %16 = vector.load %arg4[%c0_4, %c0_5] : memref<128x128xf32, #tpu.memory_space<vmem>>, vector<128x128xf32>
    %cst = arith.constant dense<0.000000e+00> : vector<128x128xf32>
    %17 = tpu.matmul %14, %16, %cst {dimension_numbers = #tpu.dot_dimension_numbers<[0], [0], [1], [1], [0, 1, 1, 1], [], []>} : vector<128x128xf32>, vector<128x128xf32>, vector<128x128xf32> -> vector<128x128xf32>
    %18 = arith.addf %15, %17 : vector<128x128xf32>
    %c0_6 = arith.constant 0 : index
    %c0_7 = arith.constant 0 : index
    %19 = vector.load %arg7[%c0_6, %c0_7] : memref<128x128xf32, #tpu.memory_space<vmem>>, vector<128x128xf32>
    tpu.vector_store %arg7[%c0_6, %c0_7], %18 {strides = array<i32>} : memref<128x128xf32, #tpu.memory_space<vmem>>, vector<128x128xf32>,
    %c0_8 = arith.constant 0 : index
    %c0_9 = arith.constant 0 : index
    %20 = vector.load %arg8[%c0_8, %c0_9] : memref<1x128xf32, #tpu.memory_space<vmem>>, vector<1x128xf32>
    %cst_10 = arith.constant dense<0.000000e+00> : vector<128xf32>
    %21 = vector.multi_reduction <add>, %14, %cst_10 [0] : vector<128x128xf32> to vector<128xf32>
    %22 = vector.shape_cast %21 : vector<128xf32> to vector<1x128xf32>
    %23 = arith.addf %20, %22 : vector<1x128xf32>
    %c0_11 = arith.constant 0 : index
    %c0_12 = arith.constant 0 : index
    %24 = vector.load %arg8[%c0_11, %c0_12] : memref<1x128xf32, #tpu.memory_space<vmem>>, vector<1x128xf32>
    tpu.vector_store %arg8[%c0_11, %c0_12], %23 {strides = array<i32>} : memref<1x128xf32, #tpu.memory_space<vmem>>, vector<1x128xf32>,
    %c0_i32_13 = arith.constant 0 : i32
    %25 = arith.cmpi eq, %arg1, %c0_i32_13 : i32
    %26 = arith.extui %25 : i1 to i32
    %c0_i32_14 = arith.constant 0 : i32
    %27 = arith.cmpi ne, %26, %c0_i32_14 : i32
    scf.if %27 {
      %c0_15 = arith.constant 0 : index
      %c0_16 = arith.constant 0 : index
      %28 = vector.load %arg8[%c0_15, %c0_16] : memref<1x128xf32, #tpu.memory_space<vmem>>, vector<1x128xf32>
      %cst_17 = arith.constant 5.000000e-01 : f32
      %29 = vector.broadcast %cst_17 : f32 to vector<1x128xf32>
      %30 = arith.cmpf ogt, %28, %29 : vector<1x128xf32>
      %31 = arith.extui %30 : vector<1x128xi1> to vector<1x128xi32>
      %32 = arith.sitofp %31 : vector<1x128xi32> to vector<1x128xf32>
      %cst_18 = arith.constant 1.000000e+00 : f32
      %33 = vector.broadcast %cst_18 : f32 to vector<1x128xf32>
      %34 = arith.maximumf %28, %33 : vector<1x128xf32>
      %cst_19 = arith.constant 2.000000e+01 : f32
      %35 = vector.broadcast %cst_19 : f32 to vector<1x128xf32>
      %36 = arith.divf %35, %34 : vector<1x128xf32>
      %c0_20 = arith.constant 0 : index
      %c0_21 = arith.constant 0 : index
      %37 = vector.load %arg6[%c0_20, %c0_21] : memref<8x128xf32, #tpu.memory_space<vmem>>, vector<8x128xf32>
      %c0_22 = arith.constant 0 : index
      %c0_23 = arith.constant 0 : index
      %38 = vector.load %arg7[%c0_22, %c0_23] : memref<128x128xf32, #tpu.memory_space<vmem>>, vector<128x128xf32>
      %cst_24 = arith.constant dense<0.000000e+00> : vector<8x128xf32>
      %39 = tpu.matmul %37, %38, %cst_24 {dimension_numbers = #tpu.dot_dimension_numbers<[1], [1], [0], [0], [0, 0, 1, 0], [], []>} : vector<8x128xf32>, vector<128x128xf32>, vector<8x128xf32> -> vector<8x128xf32>
      %40 = vector.broadcast %36 : vector<1x128xf32> to vector<8x128xf32>
      %41 = arith.mulf %39, %40 : vector<8x128xf32>
      %42 = math.exp %41 : vector<8x128xf32>
      %43 = vector.broadcast %32 : vector<1x128xf32> to vector<8x128xf32>
      %44 = arith.mulf %42, %43 : vector<8x128xf32>
      %c0_25 = arith.constant 0 : index
      %c0_26 = arith.constant 0 : index
      %45 = vector.load %arg5[%c0_25, %c0_26] : memref<8x128xf32, #tpu.memory_space<vmem>>, vector<8x128xf32>
      tpu.vector_store %arg5[%c0_25, %c0_26], %44 {strides = array<i32>} : memref<8x128xf32, #tpu.memory_space<vmem>>, vector<8x128xf32>,
    } else {
    }
    return
  }
  func.func @transform_0(%arg0: i32, %arg1: i32) -> (i32, i32) {
    %c0_i32 = arith.constant 0 : i32
    %c0_i32_0 = arith.constant 0 : i32
    %c0_i32_1 = arith.constant 0 : i32
    return %c0_i32, %c0_i32_0 : i32, i32
  }
  func.func @transform_1(%arg0: i32, %arg1: i32) -> (i32, i32) {
    %c0_i32 = arith.constant 0 : i32
    %c0_i32_0 = arith.constant 0 : i32
    %c0_i32_1 = arith.constant 0 : i32
    return %c0_i32, %c0_i32_0 : i32, i32
  }
  func.func @transform_2(%arg0: i32, %arg1: i32) -> (i32, i32) {
    %c0_i32 = arith.constant 0 : i32
    %c0_i32_0 = arith.constant 0 : i32
    return %arg1, %c0_i32 : i32, i32
  }
  func.func @transform_3(%arg0: i32, %arg1: i32) -> (i32, i32) {
    %c0_i32 = arith.constant 0 : i32
    %c0_i32_0 = arith.constant 0 : i32
    return %c0_i32, %arg0 : i32, i32
  }
}

module attributes {stable_mosaic.version = 11 : i64} {
  func.func @_focal_loss_kernel(%arg0: i32, %arg1: memref<8x128xf32, #tpu.memory_space<vmem>>, %arg2: memref<8x1xi32, #tpu.memory_space<vmem>>, %arg3: memref<8x1xf32, #tpu.memory_space<vmem>>, %arg4: memref<8x1xf32, #tpu.memory_space<vmem>>) attributes {dimension_semantics = [#tpu.dimension_semantics<parallel>], iteration_bounds = array<i64: 1>, scalar_prefetch = 0 : i64, scratch_operands = 0 : i64, tpu.core_type = #tpu.core_type<tc>, window_params = [{transform_indices = @transform_0, window_bounds = array<i64: 8, 128>}, {transform_indices = @transform_1, window_bounds = array<i64: 8, 1>}, {transform_indices = @transform_2, window_bounds = array<i64: 8, 1>}, {transform_indices = @transform_3, window_bounds = array<i64: 8, 1>}]} {
    %c0 = arith.constant 0 : index
    %c0_0 = arith.constant 0 : index
    %0 = vector.load %arg1[%c0, %c0_0] : memref<8x128xf32, #tpu.memory_space<vmem>>, vector<8x128xf32>
    %1 = tpu.iota {dimensions = array<i32: 1>} : vector<8x128xi32>
    %c0_1 = arith.constant 0 : index
    %c0_2 = arith.constant 0 : index
    %2 = vector.load %arg2[%c0_1, %c0_2] : memref<8x1xi32, #tpu.memory_space<vmem>>, vector<8x1xi32>
    %3 = vector.broadcast %2 : vector<8x1xi32> to vector<8x128xi32>
    %4 = arith.cmpi eq, %1, %3 : vector<8x128xi32>
    %5 = arith.extui %4 : vector<8x128xi1> to vector<8x128xi32>
    %6 = arith.sitofp %5 : vector<8x128xi32> to vector<8x128xf32>
    %cst = arith.constant 1.000000e+00 : f32
    %7 = vector.broadcast %cst : f32 to vector<8x128xf32>
    %8 = arith.subf %7, %6 : vector<8x128xf32>
    %9 = arith.mulf %0, %8 : vector<8x128xf32>
    %c0_3 = arith.constant 0 : index
    %c0_4 = arith.constant 0 : index
    %10 = vector.load %arg3[%c0_3, %c0_4] : memref<8x1xf32, #tpu.memory_space<vmem>>, vector<8x1xf32>
    %11 = vector.broadcast %10 : vector<8x1xf32> to vector<8x128xf32>
    %12 = arith.cmpf olt, %9, %11 : vector<8x128xf32>
    %cst_5 = arith.constant 0.000000e+00 : f32
    %13 = vector.broadcast %cst_5 : f32 to vector<8x128xf32>
    %14 = arith.select %12, %13, %9 : vector<8x128xi1>, vector<8x128xf32>
    %15 = arith.mulf %0, %6 : vector<8x128xf32>
    %16 = arith.addf %15, %14 : vector<8x128xf32>
    %cst_6 = arith.constant dense<0.000000e+00> : vector<8xf32>
    %17 = vector.multi_reduction <add>, %16, %cst_6 [1] : vector<8x128xf32> to vector<8xf32>
    %18 = vector.shape_cast %17 : vector<8xf32> to vector<8x1xf32>
    %cst_7 = arith.constant 9.99999997E-7 : f32
    %19 = vector.broadcast %cst_7 : f32 to vector<8x1xf32>
    %20 = arith.addf %18, %19 : vector<8x1xf32>
    %21 = arith.mulf %16, %6 : vector<8x128xf32>
    %cst_8 = arith.constant dense<0.000000e+00> : vector<8xf32>
    %22 = vector.multi_reduction <add>, %21, %cst_8 [1] : vector<8x128xf32> to vector<8xf32>
    %23 = vector.shape_cast %22 : vector<8xf32> to vector<8x1xf32>
    %24 = arith.divf %23, %20 : vector<8x1xf32>
    %cst_9 = arith.constant 9.99999997E-7 : f32
    %25 = vector.broadcast %cst_9 : f32 to vector<8x1xf32>
    %26 = arith.addf %24, %25 : vector<8x1xf32>
    %27 = math.log %26 : vector<8x1xf32>
    %cst_10 = arith.constant 0.000000e+00 : f32
    %28 = vector.broadcast %cst_10 : f32 to vector<8x1xf32>
    %29 = arith.subf %28, %27 : vector<8x1xf32>
    %c0_11 = arith.constant 0 : index
    %c0_12 = arith.constant 0 : index
    %30 = vector.load %arg4[%c0_11, %c0_12] : memref<8x1xf32, #tpu.memory_space<vmem>>, vector<8x1xf32>
    tpu.vector_store %arg4[%c0_11, %c0_12], %29 {strides = array<i32>} : memref<8x1xf32, #tpu.memory_space<vmem>>, vector<8x1xf32>,
    return
  }
  func.func @transform_0(%arg0: i32) -> (i32, i32) {
    %c0_i32 = arith.constant 0 : i32
    %c0_i32_0 = arith.constant 0 : i32
    return %arg0, %c0_i32 : i32, i32
  }
  func.func @transform_1(%arg0: i32) -> (i32, i32) {
    %c0_i32 = arith.constant 0 : i32
    %c0_i32_0 = arith.constant 0 : i32
    return %arg0, %c0_i32 : i32, i32
  }
  func.func @transform_2(%arg0: i32) -> (i32, i32) {
    %c0_i32 = arith.constant 0 : i32
    %c0_i32_0 = arith.constant 0 : i32
    return %arg0, %c0_i32 : i32, i32
  }
  func.func @transform_3(%arg0: i32) -> (i32, i32) {
    %c0_i32 = arith.constant 0 : i32
    %c0_i32_0 = arith.constant 0 : i32
    return %arg0, %c0_i32 : i32, i32
  }
}

</mosaic_0001>

<bundles_post_ra>
// kernel: neg.3
= control target key start
LH: loop header
LB: loop body
LE: loop exit
PB: predicated region body
PF: predicated region fallthrough
CT: control target
= control target key end

     0   :  { %s24_s0 = inlined_call_operand.vmem [shape: f32[8,128], index: 0, kind: input, shape index: {}]   ;;  %s25_s1 = inlined_call_operand.vmem [shape: f32[8,128], index: 1, kind: output, shape index: {}]  }
   0x1   :  { %v2_v0 = vld [vmem:[%s24_s0] sm:$0xff] }
   0x2   :  { %v5_v1 = vxor.u32 2147483648, %v2_v0 }
   0x4   :  { %7 = vst [vmem:[%s25_s1] sm:$0xff] %v5_v1 }

// kernel: hybrid_memory_multi_focal_forward.2
= control target key start
LH: loop header
LB: loop body
LE: loop exit
PB: predicated region body
PF: predicated region fallthrough
CT: control target
= control target key end

     0   :  { %8 = vsyncpa [#allocation6], 0  ;;  %s758_s12 = smov [#allocation5]   ;;  %s944_s0 = inlined_call_operand.hbm [shape: f32[8,128], index: 0, kind: input, shape index: {}]   ;;  %s945_s1 = inlined_call_operand.vmem [shape: s32[128,1], index: 1, kind: input, shape index: {}]   ;;  %s946_s2 = inlined_call_operand.vmem [shape: f32[128,128], index: 2, kind: input, shape index: {}]   ;;  %s947_s3 = inlined_call_operand.vmem [shape: f32[8,128], index: 3, kind: output, shape index: {}]  }
   0x1   :  { %s15_s13 = sshll.u32 %s758_s12, 4  ;;  %s16_s13 = int_to_ptr.vmem [resolvable:$true] %s15_s13 }
   0x2   :  { %s744_s14 = scalar_lea.vmem %s16_s13, 128  ;;  %p749_p1 = scmp.lt.s32.totalorder %s16_s13, %s16_s13 }
   0x3   :  { %p745_p0 = scmp.ne.s32.totalorder %s16_s13, %s744_s14  ;;  %p750_p2 = scmp.lt.s32.totalorder %s744_s14, %s744_s14 }
   0x5   :  { %p751_p3 = por %p750_p2, %p749_p1 }
   0x7   :  { %p752_p4 = pnand %p751_p3, %p745_p0 }
   0x9   :  { %755 = shalt.err (!%p752_p4)
}
   0xa   :  { %18 = dma.hbm_to_vmem [thread:$0]  %s944_s0, 128, %s16_s13, [#allocation6]  }
   0xb   :  { %756 = dma.done.wait [#allocation6], 128  }
   0xc   :  { %757 = vsyncadd [#allocation6], 4294967168  ;;  %v759_v0 = vmov 0   ;;  %v760_v1 = vmov 0.0   ;;  %v66_v2 = vld [vmem:[%s945_s1 + $0x10] sm:$0xff]  ;;  %v64_v3 = vld [vmem:[%s945_s1] sm:$0xff]  ;;  %v80_v32 = vlaneseq }
   0xd   :  { %727 = vset.pattern.permute.xlu1 %v759_v0  ;;  %726 = vset.pattern.permute.xlu0 %v759_v0  ;;  %61 = vst [vmem:[#allocation4] sm:$0x1] %v760_v1  ;;  %v67_v4 = vld [vmem:[%s945_s1 + $0x18] sm:$0xff]  ;;  %v65_v5 = vld [vmem:[%s945_s1 + $0x8] sm:$0xff]  ;;  %v68_v7 = vld [vmem:[%s945_s1 + $0x20] sm:$0xff] }
   0xe   :  { %687 = vmatprep.subr.mxu1 %v760_v1  ;;  %92 = vperm.xlu1 %727, %v66_v2   ;;  %v69_v6 = vld [vmem:[%s945_s1 + $0x28] sm:$0xff]  ;;  %v71_v8 = vld [vmem:[%s945_s1 + $0x38] sm:$0xff]  ;;  %v70_v9 = vld [vmem:[%s945_s1 + $0x30] sm:$0xff]  ;;  %v878_v33 = vand.u32 127, %v80_v32 }
   0xf   :  { %86 = vperm.xlu0 %726, %v64_v3   ;;  %v73_v10 = vld [vmem:[%s945_s1 + $0x48] sm:$0xff]  ;;  %v72_v11 = vld [vmem:[%s945_s1 + $0x40] sm:$0xff]  ;;  %v75_v12 = vld [vmem:[%s945_s1 + $0x58] sm:$0xff] }
  0x10   :  { %v74_v13 = vld [vmem:[%s945_s1 + $0x50] sm:$0xff]  ;;  %v77_v14 = vld [vmem:[%s945_s1 + $0x68] sm:$0xff]  ;;  %v76_v15 = vld [vmem:[%s945_s1 + $0x60] sm:$0xff] }
  0x11   :  { %v79_v16 = vld [vmem:[%s945_s1 + $0x78] sm:$0xff]  ;;  %v78_v17 = vld [vmem:[%s945_s1 + $0x70] sm:$0xff]  ;;  %v210_v20 = vld [vmem:[%s946_s2 + $0x68] sm:$0xff] }
  0x12   :  { %95 = vperm.xlu1 %727, %v67_v4   ;;  %v212_v18 = vld [vmem:[%s946_s2 + $0x78] sm:$0xff]  ;;  %v211_v19 = vld [vmem:[%s946_s2 + $0x70] sm:$0xff]  ;;  %v209_v21 = vld [vmem:[%s946_s2 + $0x60] sm:$0xff] }
  0x13   :  { %89 = vperm.xlu0 %726, %v65_v5   ;;  %631 = vmatprep.subr.mxu0 %v212_v18  ;;  %v208_v22 = vld [vmem:[%s946_s2 + $0x58] sm:$0xff]  ;;  %v207_v23 = vld [vmem:[%s946_s2 + $0x50] sm:$0xff]  ;;  %v206_v24 = vld [vmem:[%s946_s2 + $0x48] sm:$0xff] }
  0x14   :  { %632 = vmatpush3.msra.mxu0 %v212_v18  ;;  %v205_v25 = vld [vmem:[%s946_s2 + $0x40] sm:$0xff]  ;;  %v204_v26 = vld [vmem:[%s946_s2 + $0x38] sm:$0xff]  ;;  %v203_v27 = vld [vmem:[%s946_s2 + $0x30] sm:$0xff] }
  0x15   :  { %633 = vmatprep.subr.mxu0 %v211_v19  ;;  %v202_v28 = vld [vmem:[%s946_s2 + $0x28] sm:$0xff]  ;;  %v201_v29 = vld [vmem:[%s946_s2 + $0x20] sm:$0xff]  ;;  %v200_v30 = vld [vmem:[%s946_s2 + $0x18] sm:$0xff] }
  0x16   :  { %101 = vperm.xlu1 %727, %v69_v6   ;;  %634 = vmatpush3.msra.mxu0 %v211_v19  ;;  %v199_v31 = vld [vmem:[%s946_s2 + $0x10] sm:$0xff]  ;;  %v198_v34 = vld [vmem:[%s946_s2 + $0x8] sm:$0xff]  ;;  %v197_v37 = vld [vmem:[%s946_s2] sm:$0xff] }
  0x17   :  { %98 = vperm.xlu0 %726, %v68_v7   ;;  %635 = vmatprep.subr.mxu0 %v210_v20 }
  0x18   :  { %636 = vmatpush3.msra.mxu0 %v210_v20 }
  0x19   :  { %637 = vmatprep.subr.mxu0 %v209_v21 }
  0x1a   :  { %107 = vperm.xlu1 %727, %v71_v8   ;;  %638 = vmatpush3.msra.mxu0 %v209_v21 }
  0x1b   :  { %104 = vperm.xlu0 %726, %v70_v9   ;;  %639 = vmatprep.subr.mxu0 %v208_v22 }
  0x1c   :  { %640 = vmatpush3.msra.mxu0 %v208_v22 }
  0x1d   :  { %641 = vmatprep.subr.mxu0 %v207_v23 }
  0x1e   :  { %113 = vperm.xlu1 %727, %v73_v10   ;;  %642 = vmatpush3.msra.mxu0 %v207_v23 }
  0x1f   :  { %110 = vperm.xlu0 %726, %v72_v11   ;;  %643 = vmatprep.subr.mxu0 %v206_v24 }
  0x20   :  { %644 = vmatpush3.msra.mxu0 %v206_v24 }
  0x21   :  { %645 = vmatprep.subr.mxu0 %v205_v25 }
  0x22   :  { %119 = vperm.xlu1 %727, %v75_v12   ;;  %646 = vmatpush3.msra.mxu0 %v205_v25  ;;  %v422_v25 = vld [vmem:[#allocation4] sm:$0x1] }
  0x23   :  { %116 = vperm.xlu0 %726, %v74_v13   ;;  %647 = vmatprep.subr.mxu0 %v204_v26 }
  0x24   :  { %648 = vmatpush3.msra.mxu0 %v204_v26 }
  0x25   :  { %649 = vmatprep.subr.mxu0 %v203_v27 }
  0x26   :  { %125 = vperm.xlu1 %727, %v77_v14   ;;  %650 = vmatpush3.msra.mxu0 %v203_v27 }
  0x27   :  { %122 = vperm.xlu0 %726, %v76_v15   ;;  %651 = vmatprep.subr.mxu0 %v202_v28 }
  0x28   :  { %652 = vmatpush3.msra.mxu0 %v202_v28  ;;  %v918_v28 = vld [vmem:[#allocation5] sm:$0xff] }
  0x29   :  { %653 = vmatprep.subr.mxu0 %v201_v29 }
  0x2a   :  { %131 = vperm.xlu1 %727, %v79_v16   ;;  %654 = vmatpush3.msra.mxu0 %v201_v29  ;;  %v31_v29 = vmul.f32 %v918_v28, %v918_v28 }
  0x2b   :  { %128 = vperm.xlu0 %726, %v78_v17   ;;  %655 = vmatprep.subr.mxu0 %v200_v30 }
  0x2c   :  { %656 = vmatpush3.msra.mxu0 %v200_v30 }
  0x2d   :  { %657 = vmatprep.subr.mxu0 %v199_v31 }
  0x2e   :  { %658 = vmatpush3.msra.mxu0 %v199_v31 }
  0x2f   :  { %659 = vmatprep.subr.mxu0 %v198_v34 }
  0x30   :  { %660 = vmatpush3.msra.mxu0 %v198_v34 }
  0x31   :  { %661 = vmatprep.subr.mxu0 %v197_v37 }
  0x32   :  { %662 = vmatpush3.msra.mxu0 %v197_v37 }
  0x4e   :  { %32 = vadd.xlane.f32.xlu1 %v31_v29 }
  0x89   :  { %v93_v35 = vpop.permute.xlu1 %92 }
  0x8a   :  { %v87_v36 = vpop.permute.xlu0 %86  ;;  %vm135_vm1 = vcmp.eq.s32.totalorder %v878_v33, %v93_v35 }
  0x8b   :  { %vm133_vm0 = vcmp.eq.s32.totalorder %v878_v33, %v87_v36  ;;  %v567_v41 = vsel %vm135_vm1, 1.0, %v760_v1 }
  0x8c   :  { %v565_v38 = vsel %vm133_vm0, 1.0, %v760_v1  ;;  %vm761_vm0 = vmmov 0  }
  0x8d   :  { %213 = vxpose.xlu0.b32.start [1/16] %v565_v38, 128  ;;  %v96_v39 = vpop.permute.xlu1 %95  ;;  %719 = vmatprep.mubr.msk.f32.mxu1 %vm761_vm0, %v760_v1 }
  0x8e   :  { %v90_v40 = vpop.permute.xlu0 %89  ;;  %vm136_vm2 = vcmp.eq.s32.totalorder %v878_v33, %v96_v39 }
  0x8f   :  { %vm134_vm3 = vcmp.eq.s32.totalorder %v878_v33, %v90_v40  ;;  %v568_v44 = vsel %vm136_vm2, 1.0, %v760_v1 }
  0x90   :  { %v566_v42 = vsel %vm134_vm3, 1.0, %v760_v1 }
  0x91   :  { %v423_v43 = vadd.f32 %v566_v42, %v565_v38  ;;  %214 = vxpose.xlu0.b32.cont [2/16] %v566_v42, 128  ;;  %v102_v45 = vpop.permute.xlu1 %101 }
  0x92   :  { %v99_v46 = vpop.permute.xlu0 %98  ;;  %vm138_vm5 = vcmp.eq.s32.totalorder %v878_v33, %v102_v45 }
  0x93   :  { %v424_v47 = vadd.f32 %v567_v41, %v423_v43  ;;  %vm137_vm4 = vcmp.eq.s32.totalorder %v878_v33, %v99_v46  ;;  %v570_v53 = vsel %vm138_vm5, 1.0, %v760_v1 }
  0x94   :  { %v569_v49 = vsel %vm137_vm4, 1.0, %v760_v1 }
  0x95   :  { %v425_v48 = vadd.f32 %v568_v44, %v424_v47  ;;  %215 = vxpose.xlu0.b32.cont [3/16] %v567_v41, 128  ;;  %v108_v50 = vpop.permute.xlu1 %107 }
  0x96   :  { %v105_v51 = vpop.permute.xlu0 %104  ;;  %vm140_vm7 = vcmp.eq.s32.totalorder %v878_v33, %v108_v50 }
  0x97   :  { %v426_v52 = vadd.f32 %v569_v49, %v425_v48  ;;  %vm139_vm6 = vcmp.eq.s32.totalorder %v878_v33, %v105_v51  ;;  %v572_v59 = vsel %vm140_vm7, 1.0, %v760_v1 }
  0x98   :  { %v571_v55 = vsel %vm139_vm6, 1.0, %v760_v1 }
  0x99   :  { %v427_v54 = vadd.f32 %v570_v53, %v426_v52  ;;  %216 = vxpose.xlu0.b32.cont [4/16] %v568_v44, 128  ;;  %v114_v56 = vpop.permute.xlu1 %113 }
  0x9a   :  { %v111_v57 = vpop.permute.xlu0 %110  ;;  %vm142_vm9 = vcmp.eq.s32.totalorder %v878_v33, %v114_v56 }
  0x9b   :  { %v428_v58 = vadd.f32 %v571_v55, %v427_v54  ;;  %vm141_vm8 = vcmp.eq.s32.totalorder %v878_v33, %v111_v57  ;;  %v574_v2 = vsel %vm142_vm9, 1.0, %v760_v1 }
  0x9c   :  { %v573_v61 = vsel %vm141_vm8, 1.0, %v760_v1 }
  0x9d   :  { %v429_v60 = vadd.f32 %v572_v59, %v428_v58  ;;  %217 = vxpose.xlu0.b32.cont [5/16] %v569_v49, 128  ;;  %v120_v62 = vpop.permute.xlu1 %119 }
  0x9e   :  { %v117_v63 = vpop.permute.xlu0 %116  ;;  %vm144_vm11 = vcmp.eq.s32.totalorder %v878_v33, %v120_v62 }
  0x9f   :  { %v430_v0 = vadd.f32 %v573_v61, %v429_v60  ;;  %vm143_vm10 = vcmp.eq.s32.totalorder %v878_v33, %v117_v63  ;;  %v576_v8 = vsel %vm144_vm11, 1.0, %v760_v1 }
  0xa0   :  { %v575_v4 = vsel %vm143_vm10, 1.0, %v760_v1 }
  0xa1   :  { %v431_v3 = vadd.f32 %v574_v2, %v430_v0  ;;  %218 = vxpose.xlu0.b32.cont [6/16] %v570_v53, 128  ;;  %v126_v5 = vpop.permute.xlu1 %125 }
  0xa2   :  { %v123_v6 = vpop.permute.xlu0 %122  ;;  %vm146_vm13 = vcmp.eq.s32.totalorder %v878_v33, %v126_v5 }
  0xa3   :  { %v432_v7 = vadd.f32 %v575_v4, %v431_v3  ;;  %vm145_vm12 = vcmp.eq.s32.totalorder %v878_v33, %v123_v6  ;;  %v578_v14 = vsel %vm146_vm13, 1.0, %v760_v1 }
  0xa4   :  { %v577_v10 = vsel %vm145_vm12, 1.0, %v760_v1 }
  0xa5   :  { %v433_v9 = vadd.f32 %v576_v8, %v432_v7  ;;  %219 = vxpose.xlu0.b32.cont [7/16] %v571_v55, 128  ;;  %v132_v11 = vpop.permute.xlu1 %131 }
  0xa6   :  { %v129_v12 = vpop.permute.xlu0 %128  ;;  %vm148_vm15 = vcmp.eq.s32.totalorder %v878_v33, %v132_v11 }
  0xa7   :  { %v434_v13 = vadd.f32 %v577_v10, %v433_v9  ;;  %vm147_vm14 = vcmp.eq.s32.totalorder %v878_v33, %v129_v12  ;;  %v580_v18 = vsel %vm148_vm15, 1.0, %v760_v1  ;;  %v545_v12 = vshrl.u32 %v80_v32, 7 }
  0xa8   :  { %v579_v16 = vsel %vm147_vm14, 1.0, %v760_v1 }
  0xa9   :  { %v435_v15 = vadd.f32 %v578_v14, %v434_v13  ;;  %220 = vxpose.xlu0.b32.cont [8/16] %v572_v59, 128 }
  0xab   :  { %v436_v17 = vadd.f32 %v579_v16, %v435_v15 }
  0xad   :  { %v437_v19 = vadd.f32 %v580_v18, %v436_v17  ;;  %221 = vxpose.xlu0.b32.cont [9/16] %v573_v61, 128 }
  0xaf   :  { %v438_v20 = vrot.slane %v437_v19, 4 }
  0xb1   :  { %v439_v21 = vadd.f32 %v438_v20, %v437_v19  ;;  %222 = vxpose.xlu0.b32.cont [10/16] %v574_v2, 128 }
  0xb3   :  { %v440_v22 = vrot.slane %v439_v21, 2 }
  0xb5   :  { %v441_v23 = vadd.f32 %v440_v22, %v439_v21  ;;  %223 = vxpose.xlu0.b32.cont [11/16] %v575_v4, 128 }
  0xb7   :  { %v442_v24 = vrot.slane %v441_v23, 1 }
  0xb9   :  { %v443_v26 = vadd.f32 %v442_v24, %v441_v23  ;;  %224 = vxpose.xlu0.b32.cont [12/16] %v576_v8, 128 }
  0xbb   :  { %v444_v27 = vadd.f32 %v443_v26, %v422_v25 }
  0xbd   :  { %445 = vst [vmem:[#allocation4] sm:$0x1] %v444_v27  ;;  %225 = vxpose.xlu0.b32.cont [13/16] %v577_v10, 128 }
  0xc1   :  { %226 = vxpose.xlu0.b32.cont [14/16] %v578_v14, 128  ;;  %v546_v14 = vsub.s32 0, %v545_v12 }
  0xc4   :  { %v449_v9 = vld [vmem:[#allocation4] sm:$0x1] }
  0xc5   :  { %227 = vxpose.xlu0.b32.cont [15/16] %v579_v16, 128  ;;  %v453_v10 = vmax.f32 %v449_v9, 1.0  ;;  %vm450_vm3 = vcmp.gt.f32.partialorder %v449_v9, 0.5 }
  0xc6   :  { %v581_v20 = vsel %vm450_vm3, 1.0, %v760_v1 }
  0xc7   :  { %v556_v21 = vrot.slane %v581_v20, %v546_v14 }
  0xc9   :  { %228 = vxpose.xlu0.b32.end [16/16] %v580_v18, 128 }
  0xd7   :  { %v33_v63 = vpop.xlane.xlu1 %32 }
  0xd8   :  { %728 = vrsqrt.f32 %v33_v63  ;;  %vm36_vm1 = vcmp.eq.f32.partialorder %v33_v63, inf  ;;  %v39_v3 = vand.u32 2147483648, %v33_v63  ;;  %vm38_vm2 = vcmp.eq.f32.partialorder %v33_v63, 0.0 }
  0xe5   :  { %v729_v0 = vpop.eup %728 }
  0xe6   :  { %v35_v2 = vmul.f32 %v729_v0, %v33_v63 }
  0xe8   :  { %v37_v4 = vsel %vm36_vm1, %v33_v63, %v35_v2 }
  0xe9   :  { %v40_v5 = vsel %vm38_vm2, %v39_v3, %v37_v4 }
  0xea   :  { %v41_v6 = vmax.f32 %v40_v5, 1e-12 }
  0xec   :  { %730 = vrcp.f32 %v41_v6 }
  0xed   :  { %732 = vrcp.f32 %v453_v10 }
  0xf9   :  { %v731_v7 = vpop.eup %730 }
  0xfa   :  { %v43_v8 = vmul.f32 %v731_v7, %v918_v28  ;;  %v733_v11 = vpop.eup %732 }
  0xfb   :  { %v455_v13 = vmul.f32 20.0, %v733_v11 }
  0xfd   :  { %v547_v15 = vrot.slane %v455_v13, %v546_v14 }
 0x109   :  { %v229_v30 = vpop.trf.xlu0 }
 0x10a   :  { %663 = vmatprep.mubr.f32.mxu0 %v229_v30 }
 0x10d   :  { %v230_v31 = vpop.trf.xlu0 }
 0x10e   :  { %664 = vmatmul.mubr.f32.vlgmr.msra.gmra.mxu0 %v230_v31 }
 0x111   :  { %v231_v33 = vpop.trf.xlu0 }
 0x112   :  { %666 = vmatprep.mubr.f32.mxu0 %v231_v33 }
 0x115   :  { %v232_v34 = vpop.trf.xlu0 }
 0x116   :  { %667 = vmatmul.mubr.f32.gmra.mxu0 %v232_v34 }
 0x119   :  { %v233_v35 = vpop.trf.xlu0 }
 0x11a   :  { %669 = vmatprep.mubr.f32.mxu0 %v233_v35 }
 0x11d   :  { %v234_v36 = vpop.trf.xlu0 }
 0x11e   :  { %670 = vmatmul.mubr.f32.gmra.mxu0 %v234_v36 }
 0x121   :  { %v235_v37 = vpop.trf.xlu0 }
 0x122   :  { %672 = vmatprep.mubr.f32.mxu0 %v235_v37 }
 0x125   :  { %v236_v38 = vpop.trf.xlu0 }
 0x126   :  { %673 = vmatmul.mubr.f32.gmra.mxu0 %v236_v38 }
 0x129   :  { %v237_v39 = vpop.trf.xlu0 }
 0x12a   :  { %675 = vmatprep.mubr.f32.mxu0 %v237_v39 }
 0x12d   :  { %v238_v40 = vpop.trf.xlu0 }
 0x12e   :  { %676 = vmatmul.mubr.f32.gmra.mxu0 %v238_v40 }
 0x131   :  { %v239_v41 = vpop.trf.xlu0 }
 0x132   :  { %678 = vmatprep.mubr.f32.mxu0 %v239_v41 }
 0x135   :  { %v240_v42 = vpop.trf.xlu0 }
 0x136   :  { %679 = vmatmul.mubr.f32.gmra.mxu0 %v240_v42 }
 0x139   :  { %v241_v43 = vpop.trf.xlu0 }
 0x13a   :  { %681 = vmatprep.mubr.f32.mxu0 %v241_v43 }
 0x13d   :  { %v242_v44 = vpop.trf.xlu0 }
 0x13e   :  { %682 = vmatmul.mubr.f32.gmra.mxu0 %v242_v44 }
 0x141   :  { %v243_v45 = vpop.trf.xlu0 }
 0x142   :  { %684 = vmatprep.mubr.f32.mxu0 %v243_v45 }
 0x145   :  { %v244_v46 = vpop.trf.xlu0 }
 0x146   :  { %685 = vmatmul.mubr.f32.gmra.mxu0 %v244_v46 }
 0x1ce   :  { %v665_v47 = vpop.f32.mrf.mxu0 }
 0x1d0   :  { %v311_v48 = vpop.f32.mrf.mxu0 }
 0x1d6   :  { %v668_v49 = vpop.f32.mrf.mxu0 }
 0x1d8   :  { %v321_v50 = vpop.f32.mrf.mxu0 }
 0x1de   :  { %v671_v51 = vpop.f32.mrf.mxu0 }
 0x1e0   :  { %v331_v52 = vpop.f32.mrf.mxu0 }
 0x1e6   :  { %v674_v53 = vpop.f32.mrf.mxu0 }
 0x1e8   :  { %v341_v54 = vpop.f32.mrf.mxu0 }
 0x1ee   :  { %v677_v55 = vpop.f32.mrf.mxu0 }
 0x1f0   :  { %v351_v56 = vpop.f32.mrf.mxu0 }
 0x1f6   :  { %v680_v57 = vpop.f32.mrf.mxu0 }
 0x1f8   :  { %v361_v58 = vpop.f32.mrf.mxu0 }
 0x1fe   :  { %v683_v59 = vpop.f32.mrf.mxu0 }
 0x200   :  { %v371_v60 = vpop.f32.mrf.mxu0 }
 0x206   :  { %v686_v61 = vpop.f32.mrf.mxu0 }
 0x207   :  { %688 = vmatpush3.xpose.msra.mxu1 %v686_v61 }
 0x208   :  { %689 = vmatprep.subr.mxu1 %v760_v1  ;;  %v381_v62 = vpop.f32.mrf.mxu0 }
 0x20b   :  { %690 = vmatpush3.xpose.msra.mxu1 %v381_v62 }
 0x20c   :  { %691 = vmatprep.subr.mxu1 %v760_v1 }
 0x20f   :  { %692 = vmatpush3.xpose.msra.mxu1 %v683_v59 }
 0x210   :  { %693 = vmatprep.subr.mxu1 %v760_v1 }
 0x213   :  { %694 = vmatpush3.xpose.msra.mxu1 %v371_v60 }
 0x214   :  { %695 = vmatprep.subr.mxu1 %v760_v1 }
 0x217   :  { %696 = vmatpush3.xpose.msra.mxu1 %v680_v57 }
 0x218   :  { %697 = vmatprep.subr.mxu1 %v760_v1 }
 0x21b   :  { %698 = vmatpush3.xpose.msra.mxu1 %v361_v58 }
 0x21c   :  { %699 = vmatprep.subr.mxu1 %v760_v1 }
 0x21f   :  { %700 = vmatpush3.xpose.msra.mxu1 %v677_v55 }
 0x220   :  { %701 = vmatprep.subr.mxu1 %v760_v1 }
 0x223   :  { %702 = vmatpush3.xpose.msra.mxu1 %v351_v56 }
 0x224   :  { %703 = vmatprep.subr.mxu1 %v760_v1 }
 0x227   :  { %704 = vmatpush3.xpose.msra.mxu1 %v674_v53 }
 0x228   :  { %705 = vmatprep.subr.mxu1 %v760_v1 }
 0x22b   :  { %706 = vmatpush3.xpose.msra.mxu1 %v341_v54 }
 0x22c   :  { %707 = vmatprep.subr.mxu1 %v760_v1 }
 0x22f   :  { %708 = vmatpush3.xpose.msra.mxu1 %v671_v51 }
 0x230   :  { %709 = vmatprep.subr.mxu1 %v760_v1 }
 0x233   :  { %710 = vmatpush3.xpose.msra.mxu1 %v331_v52 }
 0x234   :  { %711 = vmatprep.subr.mxu1 %v760_v1 }
 0x237   :  { %712 = vmatpush3.xpose.msra.mxu1 %v668_v49 }
 0x238   :  { %713 = vmatprep.subr.mxu1 %v760_v1 }
 0x23b   :  { %714 = vmatpush3.xpose.msra.mxu1 %v321_v50 }
 0x23c   :  { %715 = vmatprep.subr.mxu1 %v760_v1 }
 0x23f   :  { %716 = vmatpush3.xpose.msra.mxu1 %v665_v47 }
 0x240   :  { %717 = vmatprep.subr.mxu1 %v760_v1 }
 0x243   :  { %718 = vmatpush3.xpose.msra.mxu1 %v311_v48 }
 0x246   :  { %720 = vmatmul.mubr.f32.vlgmr.msra.gmra.mxu1 %v43_v8 }
 0x306   :  { %v539_v16 = vpop.f32.mrf.mxu1 }
 0x307   :  { %v549_v17 = vmul.f32 %v547_v15, %v539_v16 }
 0x308   :  { %v721_v18 = vpop.f32.mrf.mxu1 }
 0x309   :  { %v550_v19 = vmul.f32 1.442695, %v549_v17 }
 0x30b   :  { %734 = vpow2.f32 %v550_v19 }
 0x318   :  { %v735_v22 = vpop.eup %734 }
 0x319   :  { %v558_v23 = vmul.f32 %v735_v22, %v556_v21 }
 0x31b   :  { %559 = vst [vmem:[%s947_s3] sm:$0xff] %v558_v23 }
 0x31c   :  { %564 = vsyncpa [#allocation6], 1 }

// kernel: hybrid_memory_multi_focal_forward.3
= control target key start
LH: loop header
LB: loop body
LE: loop exit
PB: predicated region body
PF: predicated region fallthrough
CT: control target
= control target key end

     0   :  { %v62_v0 = vmov 0   ;;  %v15_v3 = vlaneseq  ;;  %v63_v6 = vmov 0.0   ;;  %vm48_vm2 = vcmask 7168   ;;  %s96_s1 = inlined_call_operand.vmem [shape: s32[8,1], index: 1, kind: input, shape index: {}]   ;;  %s97_s2 = inlined_call_operand.vmem [shape: f32[8,1], index: 2, kind: input, shape index: {}]   ;;  %s98_s0 = inlined_call_operand.vmem [shape: f32[8,128], index: 0, kind: input, shape index: {}]   ;;  %s99_s3 = inlined_call_operand.vmem [shape: f32[8,1], index: 3, kind: output, shape index: {}]  }
   0x1   :  { %57 = vset.pattern.permute.xlu0 %v62_v0  ;;  %v17_v1 = vld [vmem:[%s96_s1] sm:$0xff] }
   0x2   :  { %19 = vperm.xlu0 %57, %v17_v1   ;;  %v26_v2 = vld [vmem:[%s97_s2] sm:$0xff]  ;;  %v16_v4 = vand.u32 127, %v15_v3 }
   0x3   :  { %v14_v9 = vld [vmem:[%s98_s0] sm:$0xff] }
   0x6   :  { %29 = vperm.xlu0 %57, %v26_v2  }
  0x7d   :  { %v20_v5 = vpop.permute.xlu0 %19 }
  0x7e   :  { %vm21_vm0 = vcmp.eq.s32.totalorder %v16_v4, %v20_v5 }
  0x7f   :  { %v54_v7 = vsel %vm21_vm0, 1.0, %v63_v6 }
  0x80   :  { %v24_v8 = vsub.f32 1.0, %v54_v7  ;;  %v34_v12 = vmul.f32 %v54_v7, %v14_v9 }
  0x81   :  { %v30_v11 = vpop.permute.xlu0 %29 }
  0x82   :  { %v25_v10 = vmul.f32 %v24_v8, %v14_v9 }
  0x84   :  { %vm32_vm1 = vcmp.lt.f32.partialorder %v25_v10, %v30_v11 }
  0x85   :  { %v33_v13 = vsel %vm32_vm1, 0.0, %v25_v10 }
  0x86   :  { %v35_v14 = vadd.f32 %v34_v12, %v33_v13 }
  0x88   :  { %36 = vadd.xlane.f32.xlu1 %v35_v14  ;;  %v39_v15 = vmul.f32 %v54_v7, %v35_v14 }
  0x8c   :  { %40 = vadd.xlane.f32.xlu1 %v39_v15 }
 0x111   :  { %v37_v16 = vpop.xlane.xlu1 %36 }
 0x112   :  { %v38_v17 = vadd.f32 1e-06, %v37_v16 }
 0x114   :  { %58 = vrcp.f32 %v38_v17 }
 0x115   :  { %v41_v19 = vpop.xlane.xlu1 %40 }
 0x121   :  { %v59_v18 = vpop.eup %58 }
 0x122   :  { %v43_v20 = vmul.f32 %v59_v18, %v41_v19 }
 0x124   :  { %v44_v21 = vadd.f32 1e-06, %v43_v20 }
 0x126   :  { %60 = vlog2.f32 %v44_v21 }
 0x133   :  { %v61_v22 = vpop.eup %60 }
 0x134   :  { %v46_v23 = vmul.f32 0.6931472, %v61_v22 }
 0x136   :  { %v47_v24 = vsub.f32 0.0, %v46_v23 }
 0x138   :  { %49 = vst.msk [vmem:[%s99_s3] sm:$0xff] %vm48_vm2, %v47_v24 }

</bundles_post_ra>
